<compile_context>
chip_gen: v6e
topology: v6e:2x2x1
jax: 0.10.0
libtpu: 0.0.40
codegen_flags: <defaults>
</compile_context>

<pallas_src>
import functools

import jax
import jax.numpy as jnp
import numpy as np
from jax.experimental import pallas as pl
from jax.experimental.pallas import tpu as pltpu


def _round_up(x, m):
    return ((x + m - 1) // m) * m


# ----------------------------------------------------------------------------
# Pallas kernel: fused windowed-iDFT matmul -> overlap-add -> trim + normalize
# ----------------------------------------------------------------------------
def _istft_kernel(x_ref, basis_ref, envinv_ref, out_ref, frames_ref, acc_ref,
                  *, bt, n_frames, hop, n_fft, out_start):
    # x_ref      : (bt*n_frames, Kpad)   stacked [re|im] spec, frame-major rows
    # basis_ref  : (Kpad, n_fft)         windowed inverse-rDFT basis
    # envinv_ref : (1, out_len_pad)      1 / sum_t window^2 (trimmed, 0-padded)
    # out_ref    : (bt, out_len_pad)
    # frames_ref : (bt*n_frames, n_fft)  VMEM scratch (windowed time frames)
    # acc_ref    : (bt, acc_len)         VMEM scratch (overlap-add accumulator)

    # Single MXU matmul; window/Hermitian weights already folded into basis.
    frames_ref[...] = jnp.dot(x_ref[...], basis_ref[...],
                              preferred_element_type=jnp.float32)

    # Overlap-add: frame t lives in rows [t*bt, (t+1)*bt) of frames_ref, so
    # every step is a batch-dense (bt, n_fft) slab add (no single-row RMWs).
    acc_ref[...] = jnp.zeros_like(acc_ref)

    def ola_step(t):
        acc_ref[:, pl.ds(t * hop, n_fft)] += frames_ref[pl.ds(t * bt, bt), :]

    if n_frames <= 32:
        for t in range(n_frames):          # short trip count: static unroll
            ola_step(t)
    else:
        @pl.loop(0, n_frames)              # long sequences: bounded code size
        def _(t):
            ola_step(t)

    # center=True trim + window-envelope normalization, lane-dense store.
    out_len_pad = out_ref.shape[-1]
    out_ref[...] = acc_ref[:, pl.ds(out_start, out_len_pad)] * envinv_ref[...]


# ----------------------------------------------------------------------------
# Wrapper: host-side basis/envelope construction + batch blocking + pallas_call
# ----------------------------------------------------------------------------
def istft_pallas(spec_re, spec_im, *, n_fft, hop, window, target_rows=256):
    B, F, T = spec_re.shape
    assert F == n_fft // 2 + 1
    assert T >= 2, "need at least two frames for center=True istft"
    window = np.asarray(jax.device_get(window), dtype=np.float64)
    # TODO(synk): win_length < n_fft (centered zero-padding of the window) not implemented.
    assert window.shape == (n_fft,), "win_length != n_fft not supported"

    out_start = n_fft // 2
    out_len = hop * (T - 1)                  # torch.istft, center=True, length=None
    out_len_pad = _round_up(out_len, 128)    # lane-dense output stores
    out_full = n_fft + hop * (T - 1)
    acc_len = max(out_full, out_start + out_len_pad)

    # ---- batch blocking: Bt batch elements per grid step (~target_rows MXU rows)
    bt = max(1, min(B, -(-target_rows // T)))
    if bt < B:
        bt = min(B, _round_up(bt, 8))        # keep sublane block dims 8-aligned
    b_pad = _round_up(B, bt)
    nblk = b_pad // bt

    # ---- host constants (float64 build -> float32), window folded into basis
    k = np.arange(F, dtype=np.int64)[:, None]
    n = np.arange(n_fft, dtype=np.int64)[None, :]
    ang = 2.0 * np.pi * ((k * n) % n_fft).astype(np.float64) / n_fft
    wgt = np.full((F, 1), 2.0, np.float64)
    wgt[0, 0] = 1.0
    wgt[-1, 0] = 1.0
    cb = wgt * np.cos(ang) * window[None, :] / n_fft      # real-part basis
    sb = -wgt * np.sin(ang) * window[None, :] / n_fft     # imag-part basis
    sb[0, :] = 0.0                                        # DC imag ignored (irfft)
    sb[-1, :] = 0.0                                       # Nyquist imag ignored
    k_pad = _round_up(2 * F, 8)                           # explicit contraction pad
    basis = np.zeros((k_pad, n_fft), np.float32)
    basis[:F] = cb
    basis[F:2 * F] = sb

    env = np.zeros((out_full,), np.float64)
    wsq = window * window
    for t in range(T):
        env[t * hop:t * hop + n_fft] += wsq
    env_t = env[out_start:out_start + out_len]
    if np.min(env_t) < 1e-11:
        raise ValueError("window/hop pair violates NOLA (zero overlap-add envelope)")
    envinv = np.zeros((1, out_len_pad), np.float32)
    envinv[0, :out_len] = 1.0 / env_t

    # ---- spectrogram layout: (B,F,T) x2 -> (nblk*T*bt, Kpad), frame-major per block
    x = jnp.concatenate([spec_re, spec_im], axis=1).astype(jnp.float32)   # (B, 2F, T)
    x = jnp.swapaxes(x, 1, 2)                                             # (B, T, 2F)
    x = jnp.pad(x, ((0, b_pad - B), (0, 0), (0, k_pad - 2 * F)))
    x = (x.reshape(nblk, bt, T, k_pad)
          .transpose(0, 2, 1, 3)
          .reshape(nblk * T * bt, k_pad))

    kernel = functools.partial(_istft_kernel, bt=bt, n_frames=T, hop=hop,
                               n_fft=n_fft, out_start=out_start)

    # Only raise the scoped-VMEM limit when the per-step working set needs it.
    vmem_need = 4 * (2 * bt * T * k_pad + 2 * k_pad * n_fft + 2 * out_len_pad
                     + 2 * bt * out_len_pad + bt * T * n_fft + bt * acc_len)
    cp = dict(dimension_semantics=("parallel",))
    if vmem_need > 24 * 1024 * 1024:
        cp["vmem_limit_bytes"] = min(int(vmem_need * 1.25), 100 * 1024 * 1024)

    out = pl.pallas_call(
        kernel,
        out_shape=jax.ShapeDtypeStruct((b_pad, out_len_pad), jnp.float32),
        grid_spec=pltpu.PrefetchScalarGridSpec(
            num_scalar_prefetch=0,
            grid=(nblk,),
            in_specs=[
                pl.BlockSpec((bt * T, k_pad), lambda i: (i, 0)),    # spec block
                pl.BlockSpec((k_pad, n_fft), lambda i: (0, 0)),     # fused basis (grid-invariant)
                pl.BlockSpec((1, out_len_pad), lambda i: (0, 0)),   # 1/envelope (grid-invariant)
            ],
            out_specs=pl.BlockSpec((bt, out_len_pad), lambda i: (i, 0)),
            scratch_shapes=[
                pltpu.VMEM((bt * T, n_fft), jnp.float32),           # frames
                pltpu.VMEM((bt, acc_len), jnp.float32),             # OLA accumulator
            ],
        ),
        compiler_params=pltpu.CompilerParams(**cp),
    )(x, jnp.asarray(basis), jnp.asarray(envinv))

    return out[:B, :out_len]


# ----------------------------------------------------------------------------
# Pure-JAX reference (mirrors torch.istft for these settings)
# ----------------------------------------------------------------------------
def istft_ref(spec_re, spec_im, *, n_fft, hop, window):
    B, F, T = spec_re.shape
    spec = (spec_re + 1j * spec_im).transpose(0, 2, 1)            # (B, T, F)
    frames = jnp.fft.irfft(spec, n=n_fft, axis=-1) * window[None, None, :]
    out_full = n_fft + hop * (T - 1)
    y = jnp.zeros((B, out_full), jnp.float32)
    env = jnp.zeros((out_full,), jnp.float32)
    for t in range(T):
        y = y.at[:, t * hop:t * hop + n_fft].add(frames[:, t].astype(jnp.float32))
        env = env.at[t * hop:t * hop + n_fft].add(window * window)
    start, out_len = n_fft // 2, hop * (T - 1)
    return y[:, start:start + out_len] / env[start:start + out_len]


if __name__ == "__main__":
    # Small config consistent with the module (filter_length == win_length, hann).
    n_fft = 256
    hop = 64
    B, T = 2, 12
    F = n_fft // 2 + 1

    # Periodic Hann == scipy.signal.get_window('hann', n_fft, fftbins=True)
    window_np = (0.5 - 0.5 * np.cos(2.0 * np.pi * np.arange(n_fft) / n_fft)).astype(np.float32)

    key = jax.random.PRNGKey(0)
    k_re, k_im = jax.random.split(key)
    spec_re = jax.random.normal(k_re, (B, F, T), jnp.float32)
    spec_im = jax.random.normal(k_im, (B, F, T), jnp.float32)
    # DC / Nyquist bins of a real-signal STFT are purely real.
    spec_im = spec_im.at[:, 0, :].set(0.0).at[:, -1, :].set(0.0)

    out = istft_pallas(spec_re, spec_im, n_fft=n_fft, hop=hop, window=window_np)
    out = jax.block_until_ready(out)

    ref = istft_ref(spec_re, spec_im, n_fft=n_fft, hop=hop,
                    window=jnp.asarray(window_np))
    np.testing.assert_allclose(np.asarray(out), np.asarray(ref), atol=5e-3, rtol=5e-3)

    print("KERNEL_OK")
</pallas_src>

<mosaic_0001>
module attributes {stable_mosaic.version = 11 : i64} {
  func.func @_istft_kernel(%arg0: i32, %arg1: memref<24x264xf32, #tpu.memory_space<vmem>>, %arg2: memref<264x256xf32, #tpu.memory_space<vmem>>, %arg3: memref<1x768xf32, #tpu.memory_space<vmem>>, %arg4: memref<2x768xf32, #tpu.memory_space<vmem>>, %arg5: memref<24x256xf32, #tpu.memory_space<vmem>>, %arg6: memref<2x960xf32, #tpu.memory_space<vmem>>) attributes {dimension_semantics = [#tpu.dimension_semantics<parallel>], iteration_bounds = array<i64: 1>, scalar_prefetch = 0 : i64, scratch_operands = 2 : i64, tpu.core_type = #tpu.core_type<tc>, window_params = [{transform_indices = @transform_0, window_bounds = array<i64: 24, 264>}, {pipeline_mode = #tpu.pipeline_mode<synchronous>, transform_indices = @transform_1, window_bounds = array<i64: 264, 256>}, {pipeline_mode = #tpu.pipeline_mode<synchronous>, transform_indices = @transform_2, window_bounds = array<i64: 1, 768>}, {transform_indices = @transform_3, window_bounds = array<i64: 2, 768>}]} {
    %c0 = arith.constant 0 : index
    %c0_0 = arith.constant 0 : index
    %0 = vector.load %arg1[%c0, %c0_0] : memref<24x264xf32, #tpu.memory_space<vmem>>, vector<24x264xf32>
    %c0_1 = arith.constant 0 : index
    %c0_2 = arith.constant 0 : index
    %1 = vector.load %arg2[%c0_1, %c0_2] : memref<264x256xf32, #tpu.memory_space<vmem>>, vector<264x256xf32>
    %cst = arith.constant dense<0.000000e+00> : vector<24x256xf32>
    %2 = tpu.matmul %0, %1, %cst {dimension_numbers = #tpu.dot_dimension_numbers<[1], [0], [0], [1], [0, 0, 1, 1], [], []>} : vector<24x264xf32>, vector<264x256xf32>, vector<24x256xf32> -> vector<24x256xf32>
    %c0_3 = arith.constant 0 : index
    %c0_4 = arith.constant 0 : index
    %3 = vector.load %arg5[%c0_3, %c0_4] : memref<24x256xf32, #tpu.memory_space<vmem>>, vector<24x256xf32>
    tpu.vector_store %arg5[%c0_3, %c0_4], %2 {strides = array<i32>} : memref<24x256xf32, #tpu.memory_space<vmem>>, vector<24x256xf32>,
    %cst_5 = arith.constant 0.000000e+00 : f32
    %4 = vector.broadcast %cst_5 : f32 to vector<2x960xf32>
    %c0_6 = arith.constant 0 : index
    %c0_7 = arith.constant 0 : index
    %5 = vector.load %arg6[%c0_6, %c0_7] : memref<2x960xf32, #tpu.memory_space<vmem>>, vector<2x960xf32>
    tpu.vector_store %arg6[%c0_6, %c0_7], %4 {strides = array<i32>} : memref<2x960xf32, #tpu.memory_space<vmem>>, vector<2x960xf32>,
    %c0_8 = arith.constant 0 : index
    %c0_9 = arith.constant 0 : index
    %6 = vector.load %arg6[%c0_8, %c0_9] : memref<2x960xf32, #tpu.memory_space<vmem>>, vector<2x256xf32>
    %c0_10 = arith.constant 0 : index
    %c0_11 = arith.constant 0 : index
    %7 = vector.load %arg5[%c0_10, %c0_11] : memref<24x256xf32, #tpu.memory_space<vmem>>, vector<2x256xf32>
    %8 = arith.addf %6, %7 : vector<2x256xf32>
    %c0_12 = arith.constant 0 : index
    %c0_13 = arith.constant 0 : index
    %9 = vector.load %arg6[%c0_12, %c0_13] : memref<2x960xf32, #tpu.memory_space<vmem>>, vector<2x256xf32>
    tpu.vector_store %arg6[%c0_12, %c0_13], %8 {strides = array<i32>} : memref<2x960xf32, #tpu.memory_space<vmem>>, vector<2x256xf32>,
    %c0_14 = arith.constant 0 : index
    %c64 = arith.constant 64 : index
    %10 = vector.load %arg6[%c0_14, %c64] : memref<2x960xf32, #tpu.memory_space<vmem>>, vector<2x256xf32>
    %c2 = arith.constant 2 : index
    %c0_15 = arith.constant 0 : index
    %11 = vector.load %arg5[%c2, %c0_15] : memref<24x256xf32, #tpu.memory_space<vmem>>, vector<2x256xf32>
    %12 = arith.addf %10, %11 : vector<2x256xf32>
    %c0_16 = arith.constant 0 : index
    %c64_17 = arith.constant 64 : index
    %13 = vector.load %arg6[%c0_16, %c64_17] : memref<2x960xf32, #tpu.memory_space<vmem>>, vector<2x256xf32>
    tpu.vector_store %arg6[%c0_16, %c64_17], %12 {strides = array<i32>} : memref<2x960xf32, #tpu.memory_space<vmem>>, vector<2x256xf32>,
    %c0_18 = arith.constant 0 : index
    %c128 = arith.constant 128 : index
    %14 = vector.load %arg6[%c0_18, %c128] : memref<2x960xf32, #tpu.memory_space<vmem>>, vector<2x256xf32>
    %c4 = arith.constant 4 : index
    %c0_19 = arith.constant 0 : index
    %15 = vector.load %arg5[%c4, %c0_19] : memref<24x256xf32, #tpu.memory_space<vmem>>, vector<2x256xf32>
    %16 = arith.addf %14, %15 : vector<2x256xf32>
    %c0_20 = arith.constant 0 : index
    %c128_21 = arith.constant 128 : index
    %17 = vector.load %arg6[%c0_20, %c128_21] : memref<2x960xf32, #tpu.memory_space<vmem>>, vector<2x256xf32>
    tpu.vector_store %arg6[%c0_20, %c128_21], %16 {strides = array<i32>} : memref<2x960xf32, #tpu.memory_space<vmem>>, vector<2x256xf32>,
    %c0_22 = arith.constant 0 : index
    %c192 = arith.constant 192 : index
    %18 = vector.load %arg6[%c0_22, %c192] : memref<2x960xf32, #tpu.memory_space<vmem>>, vector<2x256xf32>
    %c6 = arith.constant 6 : index
    %c0_23 = arith.constant 0 : index
    %19 = vector.load %arg5[%c6, %c0_23] : memref<24x256xf32, #tpu.memory_space<vmem>>, vector<2x256xf32>
    %20 = arith.addf %18, %19 : vector<2x256xf32>
    %c0_24 = arith.constant 0 : index
    %c192_25 = arith.constant 192 : index
    %21 = vector.load %arg6[%c0_24, %c192_25] : memref<2x960xf32, #tpu.memory_space<vmem>>, vector<2x256xf32>
    tpu.vector_store %arg6[%c0_24, %c192_25], %20 {strides = array<i32>} : memref<2x960xf32, #tpu.memory_space<vmem>>, vector<2x256xf32>,
    %c0_26 = arith.constant 0 : index
    %c256 = arith.constant 256 : index
    %22 = vector.load %arg6[%c0_26, %c256] : memref<2x960xf32, #tpu.memory_space<vmem>>, vector<2x256xf32>
    %c8 = arith.constant 8 : index
    %c0_27 = arith.constant 0 : index
    %23 = vector.load %arg5[%c8, %c0_27] : memref<24x256xf32, #tpu.memory_space<vmem>>, vector<2x256xf32>
    %24 = arith.addf %22, %23 : vector<2x256xf32>
    %c0_28 = arith.constant 0 : index
    %c256_29 = arith.constant 256 : index
    %25 = vector.load %arg6[%c0_28, %c256_29] : memref<2x960xf32, #tpu.memory_space<vmem>>, vector<2x256xf32>
    tpu.vector_store %arg6[%c0_28, %c256_29], %24 {strides = array<i32>} : memref<2x960xf32, #tpu.memory_space<vmem>>, vector<2x256xf32>,
    %c0_30 = arith.constant 0 : index
    %c320 = arith.constant 320 : index
    %26 = vector.load %arg6[%c0_30, %c320] : memref<2x960xf32, #tpu.memory_space<vmem>>, vector<2x256xf32>
    %c10 = arith.constant 10 : index
    %c0_31 = arith.constant 0 : index
    %27 = vector.load %arg5[%c10, %c0_31] : memref<24x256xf32, #tpu.memory_space<vmem>>, vector<2x256xf32>
    %28 = arith.addf %26, %27 : vector<2x256xf32>
    %c0_32 = arith.constant 0 : index
    %c320_33 = arith.constant 320 : index
    %29 = vector.load %arg6[%c0_32, %c320_33] : memref<2x960xf32, #tpu.memory_space<vmem>>, vector<2x256xf32>
    tpu.vector_store %arg6[%c0_32, %c320_33], %28 {strides = array<i32>} : memref<2x960xf32, #tpu.memory_space<vmem>>, vector<2x256xf32>,
    %c0_34 = arith.constant 0 : index
    %c384 = arith.constant 384 : index
    %30 = vector.load %arg6[%c0_34, %c384] : memref<2x960xf32, #tpu.memory_space<vmem>>, vector<2x256xf32>
    %c12 = arith.constant 12 : index
    %c0_35 = arith.constant 0 : index
    %31 = vector.load %arg5[%c12, %c0_35] : memref<24x256xf32, #tpu.memory_space<vmem>>, vector<2x256xf32>
    %32 = arith.addf %30, %31 : vector<2x256xf32>
    %c0_36 = arith.constant 0 : index
    %c384_37 = arith.constant 384 : index
    %33 = vector.load %arg6[%c0_36, %c384_37] : memref<2x960xf32, #tpu.memory_space<vmem>>, vector<2x256xf32>
    tpu.vector_store %arg6[%c0_36, %c384_37], %32 {strides = array<i32>} : memref<2x960xf32, #tpu.memory_space<vmem>>, vector<2x256xf32>,
    %c0_38 = arith.constant 0 : index
    %c448 = arith.constant 448 : index
    %34 = vector.load %arg6[%c0_38, %c448] : memref<2x960xf32, #tpu.memory_space<vmem>>, vector<2x256xf32>
    %c14 = arith.constant 14 : index
    %c0_39 = arith.constant 0 : index
    %35 = vector.load %arg5[%c14, %c0_39] : memref<24x256xf32, #tpu.memory_space<vmem>>, vector<2x256xf32>
    %36 = arith.addf %34, %35 : vector<2x256xf32>
    %c0_40 = arith.constant 0 : index
    %c448_41 = arith.constant 448 : index
    %37 = vector.load %arg6[%c0_40, %c448_41] : memref<2x960xf32, #tpu.memory_space<vmem>>, vector<2x256xf32>
    tpu.vector_store %arg6[%c0_40, %c448_41], %36 {strides = array<i32>} : memref<2x960xf32, #tpu.memory_space<vmem>>, vector<2x256xf32>,
    %c0_42 = arith.constant 0 : index
    %c512 = arith.constant 512 : index
    %38 = vector.load %arg6[%c0_42, %c512] : memref<2x960xf32, #tpu.memory_space<vmem>>, vector<2x256xf32>
    %c16 = arith.constant 16 : index
    %c0_43 = arith.constant 0 : index
    %39 = vector.load %arg5[%c16, %c0_43] : memref<24x256xf32, #tpu.memory_space<vmem>>, vector<2x256xf32>
    %40 = arith.addf %38, %39 : vector<2x256xf32>
    %c0_44 = arith.constant 0 : index
    %c512_45 = arith.constant 512 : index
    %41 = vector.load %arg6[%c0_44, %c512_45] : memref<2x960xf32, #tpu.memory_space<vmem>>, vector<2x256xf32>
    tpu.vector_store %arg6[%c0_44, %c512_45], %40 {strides = array<i32>} : memref<2x960xf32, #tpu.memory_space<vmem>>, vector<2x256xf32>,
    %c0_46 = arith.constant 0 : index
    %c576 = arith.constant 576 : index
    %42 = vector.load %arg6[%c0_46, %c576] : memref<2x960xf32, #tpu.memory_space<vmem>>, vector<2x256xf32>
    %c18 = arith.constant 18 : index
    %c0_47 = arith.constant 0 : index
    %43 = vector.load %arg5[%c18, %c0_47] : memref<24x256xf32, #tpu.memory_space<vmem>>, vector<2x256xf32>
    %44 = arith.addf %42, %43 : vector<2x256xf32>
    %c0_48 = arith.constant 0 : index
    %c576_49 = arith.constant 576 : index
    %45 = vector.load %arg6[%c0_48, %c576_49] : memref<2x960xf32, #tpu.memory_space<vmem>>, vector<2x256xf32>
    tpu.vector_store %arg6[%c0_48, %c576_49], %44 {strides = array<i32>} : memref<2x960xf32, #tpu.memory_space<vmem>>, vector<2x256xf32>,
    %c0_50 = arith.constant 0 : index
    %c640 = arith.constant 640 : index
    %46 = vector.load %arg6[%c0_50, %c640] : memref<2x960xf32, #tpu.memory_space<vmem>>, vector<2x256xf32>
    %c20 = arith.constant 20 : index
    %c0_51 = arith.constant 0 : index
    %47 = vector.load %arg5[%c20, %c0_51] : memref<24x256xf32, #tpu.memory_space<vmem>>, vector<2x256xf32>
    %48 = arith.addf %46, %47 : vector<2x256xf32>
    %c0_52 = arith.constant 0 : index
    %c640_53 = arith.constant 640 : index
    %49 = vector.load %arg6[%c0_52, %c640_53] : memref<2x960xf32, #tpu.memory_space<vmem>>, vector<2x256xf32>
    tpu.vector_store %arg6[%c0_52, %c640_53], %48 {strides = array<i32>} : memref<2x960xf32, #tpu.memory_space<vmem>>, vector<2x256xf32>,
    %c0_54 = arith.constant 0 : index
    %c704 = arith.constant 704 : index
    %50 = vector.load %arg6[%c0_54, %c704] : memref<2x960xf32, #tpu.memory_space<vmem>>, vector<2x256xf32>
    %c22 = arith.constant 22 : index
    %c0_55 = arith.constant 0 : index
    %51 = vector.load %arg5[%c22, %c0_55] : memref<24x256xf32, #tpu.memory_space<vmem>>, vector<2x256xf32>
    %52 = arith.addf %50, %51 : vector<2x256xf32>
    %c0_56 = arith.constant 0 : index
    %c704_57 = arith.constant 704 : index
    %53 = vector.load %arg6[%c0_56, %c704_57] : memref<2x960xf32, #tpu.memory_space<vmem>>, vector<2x256xf32>
    tpu.vector_store %arg6[%c0_56, %c704_57], %52 {strides = array<i32>} : memref<2x960xf32, #tpu.memory_space<vmem>>, vector<2x256xf32>,
    %c0_58 = arith.constant 0 : index
    %c128_59 = arith.constant 128 : index
    %54 = vector.load %arg6[%c0_58, %c128_59] : memref<2x960xf32, #tpu.memory_space<vmem>>, vector<2x768xf32>
    %c0_60 = arith.constant 0 : index
    %c0_61 = arith.constant 0 : index
    %55 = vector.load %arg3[%c0_60, %c0_61] : memref<1x768xf32, #tpu.memory_space<vmem>>, vector<1x768xf32>
    %56 = vector.broadcast %55 : vector<1x768xf32> to vector<2x768xf32>
    %57 = arith.mulf %54, %56 : vector<2x768xf32>
    %c0_62 = arith.constant 0 : index
    %c0_63 = arith.constant 0 : index
    %58 = vector.load %arg4[%c0_62, %c0_63] : memref<2x768xf32, #tpu.memory_space<vmem>>, vector<2x768xf32>
    tpu.vector_store %arg4[%c0_62, %c0_63], %57 {strides = array<i32>} : memref<2x768xf32, #tpu.memory_space<vmem>>, vector<2x768xf32>,
    return
  }
  func.func @transform_0(%arg0: i32) -> (i32, i32) {
    %c0_i32 = arith.constant 0 : i32
    %c0_i32_0 = arith.constant 0 : i32
    return %arg0, %c0_i32 : i32, i32
  }
  func.func @transform_1(%arg0: i32) -> (i32, i32) {
    %c0_i32 = arith.constant 0 : i32
    %c0_i32_0 = arith.constant 0 : i32
    %c0_i32_1 = arith.constant 0 : i32
    return %c0_i32, %c0_i32_0 : i32, i32
  }
  func.func @transform_2(%arg0: i32) -> (i32, i32) {
    %c0_i32 = arith.constant 0 : i32
    %c0_i32_0 = arith.constant 0 : i32
    %c0_i32_1 = arith.constant 0 : i32
    return %c0_i32, %c0_i32_0 : i32, i32
  }
  func.func @transform_3(%arg0: i32) -> (i32, i32) {
    %c0_i32 = arith.constant 0 : i32
    %c0_i32_0 = arith.constant 0 : i32
    return %arg0, %c0_i32 : i32, i32
  }
}

</mosaic_0001>

<bundles_post_ra>
// kernel: tpu_custom_call.1
= control target key start
LH: loop header
LB: loop body
LE: loop exit
PB: predicated region body
PF: predicated region fallthrough
CT: control target
= control target key end

     0   :  { %8 = vsyncpa [#allocation5], 0  ;;  %s829_s0 = inlined_call_operand.hbm [shape: f32[24,264], index: 0, kind: input, shape index: {}]   ;;  %s830_s1 = inlined_call_operand.hbm [shape: f32[264,256], index: 1, kind: input, shape index: {}]   ;;  %s831_s2 = inlined_call_operand.hbm [shape: f32[1,768], index: 2, kind: input, shape index: {}]   ;;  %s832_s3 = inlined_call_operand.hbm [shape: f32[2,768], index: 3, kind: output, shape index: {}]  }
   0x1   :  { %9 = vsyncpa [#allocation8], 0 }
   0x2   :  { %10 = vsyncpa [#allocation6], 0  ;;  %s728_s12 = smov [#allocation7]  }
   0x3   :  { %s28_s13 = sshll.u32 %s728_s12, 4  ;;  %s29_s13 = int_to_ptr.vmem [resolvable:$true] %s28_s13 }
   0x4   :  { %s650_s14 = scalar_lea.vmem %s29_s13, 8448  ;;  %p655_p1 = scmp.lt.s32.totalorder %s29_s13, %s29_s13 }
   0x5   :  { %p651_p0 = scmp.ne.s32.totalorder %s29_s13, %s650_s14  ;;  %p656_p2 = scmp.lt.s32.totalorder %s650_s14, %s650_s14 }
   0x7   :  { %p657_p3 = por %p656_p2, %p655_p1 }
   0x9   :  { %p658_p4 = pnand %p657_p3, %p651_p0 }
   0xb   :  { %661 = shalt.err (!%p658_p4)
}
   0xc   :  { %s729_s15 = smov 256   ;;  %s730_s16 = smov 16  }
   0xd   :  { %34 = dma.hbm_to_vmem [thread:$0]  %s830_s1, 8448, %s29_s13, [#allocation8], %s729_s15, %s729_s15, %s730_s16  }
   0xe   :  { %s731_s19 = smov [#allocation4]  }
   0xf   :  { %s16_s20 = sshll.u32 %s731_s19, 4  ;;  %s17_s20 = int_to_ptr.vmem [resolvable:$true] %s16_s20 }
  0x10   :  { %s670_s21 = scalar_lea.vmem %s17_s20, 1152  ;;  %p675_p6 = scmp.lt.s32.totalorder %s17_s20, %s17_s20 }
  0x11   :  { %p671_p5 = scmp.ne.s32.totalorder %s17_s20, %s670_s21  ;;  %p676_p7 = scmp.lt.s32.totalorder %s670_s21, %s670_s21 }
  0x13   :  { %p677_p8 = por %p676_p7, %p675_p6 }
  0x15   :  { %p678_p9 = pnand %p677_p8, %p671_p5 }
  0x17   :  { %681 = shalt.err (!%p678_p9)
}
  0x18   :  { %s732_s22 = smov 384   ;;  %s733_s23 = smov 24  }
  0x19   :  { %22 = dma.hbm_to_vmem [thread:$0]  %s829_s0, 1152, %s17_s20, [#allocation5], %s732_s22, %s732_s22, %s733_s23  }
  0x1a   :  { %s734_s26 = smov [#allocation9]  }
  0x1b   :  { %s41_s27 = sshll.u32 %s734_s26, 4  ;;  %s42_s27 = int_to_ptr.vmem [resolvable:$true] %s41_s27 }
  0x1c   :  { %s690_s1 = scalar_lea.vmem %s42_s27, 96  ;;  %p695_p11 = scmp.lt.s32.totalorder %s42_s27, %s42_s27 }
  0x1d   :  { %p691_p10 = scmp.ne.s32.totalorder %s42_s27, %s690_s1  ;;  %p696_p12 = scmp.lt.s32.totalorder %s690_s1, %s690_s1 }
  0x1f   :  { %p697_p13 = por %p696_p12, %p695_p11 }
  0x21   :  { %p698_p0 = pnand %p697_p13, %p691_p10 }
  0x23   :  { %701 = shalt.err (!%p698_p0)
}
  0x24   :  { %44 = dma.hbm_to_vmem [thread:$0]  %s831_s2, 96, %s42_s27, [#allocation8]  }
  0x25   :  { %722 = dma.done.wait [#allocation5], 1152  }
  0x26   :  { %723 = vsyncadd [#allocation5], 4294966144 }
  0x27   :  { %724 = dma.done.wait [#allocation8], 8544  }
  0x28   :  { %725 = vsyncadd [#allocation8], 4294958752  ;;  %vm312_vm0 = vcmask 1041408   ;;  %vm313_vm1 = vcmask 1043458   ;;  %vm315_vm2 = vcmask 1045508   ;;  %v735_v0 = vmov 0.0  }
  0x29   :  { %286 = vmatprep.mubr.f32.mxu1 %v735_v0  ;;  %311 = vst [vmem:[#allocation3] sm:$0xff] %v735_v0  ;;  %vm314_vm3 = vmor %vm313_vm1, %vm312_vm0  ;;  %vm317_vm4 = vcmask 523270   ;;  %v94_v1 = vld [vmem:[#allocation7 + $0xf8] sm:$0xff]  ;;  %v93_v2 = vld [vmem:[#allocation7 + $0xf0] sm:$0xff]  ;;  %vm129_vm7 = vcmask 64512   ;;  %s737_s0 = smov 64  }
  0x2a   :  { %vm316_vm5 = vmor %vm315_vm2, %vm314_vm3  ;;  %v92_v3 = vld [vmem:[#allocation7 + $0xe8] sm:$0xff]  ;;  %139 = vmatprep.subr.mxu0 %v94_v1  ;;  %v91_v4 = vld [vmem:[#allocation7 + $0xe0] sm:$0xff]  ;;  %vm357_vm8 = vcmask 1041920   ;;  %vm359_vm10 = vcmask 521220   ;;  %vm353_vm11 = vcmask 523264   ;;  %s738_s2 = smov [#allocation10]  }
  0x2b   :  { %vm318_vm6 = vmor %vm317_vm4, %vm316_vm5  ;;  %140 = vmatpush1.msra.mxu0 %v93_v2  ;;  %v90_v5 = vld [vmem:[#allocation7 + $0xd8] sm:$0xff]  ;;  %v89_v6 = vld [vmem:[#allocation7 + $0xd0] sm:$0xff]  ;;  %s612_s30 = sshll.u32 %s738_s2, 4  ;;  %s613_s30 = int_to_ptr.vmem [resolvable:$true] %s612_s30 }
  0x2c   :  { %319 = vst.msk [vmem:[#allocation3 + $0x8] sm:$0xff] %vm318_vm6, %v735_v0  ;;  %141 = vmatprep.subr.mxu0 %v92_v3  ;;  %v88_v7 = vld [vmem:[#allocation7 + $0xc8] sm:$0xff]  ;;  %v87_v8 = vld [vmem:[#allocation7 + $0xc0] sm:$0xff]  ;;  %v86_v9 = vld [vmem:[#allocation7 + $0xb8] sm:$0xff]  ;;  %s702_s4 = scalar_lea.vmem %s613_s30, 192  ;;  %p707_p2 = scmp.lt.s32.totalorder %s613_s30, %s613_s30 }
  0x2d   :  { %142 = vmatpush1.msra.mxu0 %v91_v4  ;;  %v85_v10 = vld [vmem:[#allocation7 + $0xb0] sm:$0xff]  ;;  %v84_v11 = vld [vmem:[#allocation7 + $0xa8] sm:$0xff]  ;;  %v83_v12 = vld [vmem:[#allocation7 + $0xa0] sm:$0xff]  ;;  %p703_p1 = scmp.ne.s32.totalorder %s613_s30, %s702_s4  ;;  %p708_p3 = scmp.lt.s32.totalorder %s702_s4, %s702_s4 }
  0x2e   :  { %143 = vmatprep.subr.mxu0 %v90_v5  ;;  %v82_v13 = vld [vmem:[#allocation7 + $0x98] sm:$0xff]  ;;  %v81_v14 = vld [vmem:[#allocation7 + $0x90] sm:$0xff]  ;;  %v80_v15 = vld [vmem:[#allocation7 + $0x88] sm:$0xff] }
  0x2f   :  { %144 = vmatpush1.msra.mxu0 %v89_v6  ;;  %v79_v16 = vld [vmem:[#allocation7 + $0x80] sm:$0xff]  ;;  %v78_v17 = vld [vmem:[#allocation7 + $0x78] sm:$0xff]  ;;  %v77_v18 = vld [vmem:[#allocation7 + $0x70] sm:$0xff]  ;;  %p709_p4 = por %p708_p3, %p707_p2 }
  0x30   :  { %145 = vmatprep.subr.mxu0 %v88_v7  ;;  %v76_v19 = vld [vmem:[#allocation7 + $0x68] sm:$0xff]  ;;  %v75_v20 = vld [vmem:[#allocation7 + $0x60] sm:$0xff]  ;;  %v74_v21 = vld [vmem:[#allocation7 + $0x58] sm:$0xff] }
  0x31   :  { %146 = vmatpush1.msra.mxu0 %v87_v8  ;;  %v73_v22 = vld [vmem:[#allocation7 + $0x50] sm:$0xff]  ;;  %v72_v23 = vld [vmem:[#allocation7 + $0x48] sm:$0xff]  ;;  %v71_v25 = vld [vmem:[#allocation7 + $0x40] sm:$0xff]  ;;  %p710_p5 = pnand %p709_p4, %p703_p1 }
  0x32   :  { %147 = vmatprep.subr.mxu0 %v86_v9  ;;  %v128_v24 = vld [vmem:[#allocation7 + $0x208] sm:$0xff]  ;;  %v127_v26 = vld [vmem:[#allocation7 + $0x200] sm:$0xff]  ;;  %v70_v28 = vld [vmem:[#allocation7 + $0x38] sm:$0xff] }
  0x33   :  { %148 = vmatpush1.msra.mxu0 %v85_v10  ;;  %252 = vmatprep.subr.mxu1 %v128_v24  ;;  %v56_v27 = vld [vmem:[#allocation4 + $0x10] sm:$0xff]  ;;  %v55_v29 = vld [vmem:[#allocation4 + $0x8] sm:$0xff]  ;;  %v69_v30 = vld [vmem:[#allocation7 + $0x30] sm:$0xff] }
  0x34   :  { %149 = vmatprep.subr.mxu0 %v84_v11  ;;  %253 = vmatpush1.msra.mxu1 %v127_v26  ;;  %v68_v31 = vld [vmem:[#allocation7 + $0x28] sm:$0xff]  ;;  %v59_v32 = vld [vmem:[#allocation4 + $0x28] sm:$0xff]  ;;  %v66_v34 = vld [vmem:[#allocation7 + $0x18] sm:$0xff] }
  0x35   :  { %150 = vmatpush1.msra.mxu0 %v83_v12  ;;  %622 = vmatmul.mubr.msk.f32.vlgmr.msra.gmra.mxu1 %vm129_vm7, %v56_v27  ;;  %v67_v33 = vld [vmem:[#allocation7 + $0x20] sm:$0xff]  ;;  %v65_v35 = vld [vmem:[#allocation7 + $0x10] sm:$0xff]  ;;  %v64_v36 = vld [vmem:[#allocation7 + $0x8] sm:$0xff] }
  0x36   :  { %151 = vmatprep.subr.mxu0 %v82_v13  ;;  %203 = vmatprep.mubr.f32.mxu0 %v55_v29  ;;  %v62_v37 = vld [vmem:[#allocation4 + $0x40] sm:$0xff]  ;;  %v63_v38 = vld [vmem:[#allocation7] sm:$0xff]  ;;  %v125_v40 = vld [vmem:[#allocation7 + $0x1f0] sm:$0xff] }
  0x37   :  { %152 = vmatpush1.msra.mxu0 %v81_v14  ;;  %292 = vmatprep.mubr.f32.mxu1 %v735_v0  ;;  %v126_v39 = vld [vmem:[#allocation7 + $0x1f8] sm:$0xff]  ;;  %v124_v41 = vld [vmem:[#allocation7 + $0x1e8] sm:$0xff]  ;;  %v123_v42 = vld [vmem:[#allocation7 + $0x1e0] sm:$0xff] }
  0x38   :  { %153 = vmatprep.subr.mxu0 %v80_v15  ;;  %v122_v43 = vld [vmem:[#allocation7 + $0x1d8] sm:$0xff]  ;;  %v121_v44 = vld [vmem:[#allocation7 + $0x1d0] sm:$0xff]  ;;  %v120_v45 = vld [vmem:[#allocation7 + $0x1c8] sm:$0xff] }
  0x39   :  { %154 = vmatpush1.msra.mxu0 %v79_v16  ;;  %623 = vmatmul.mubr.msk.f32.gmra.mxu1 %vm129_vm7, %v59_v32  ;;  %v119_v46 = vld [vmem:[#allocation7 + $0x1c0] sm:$0xff]  ;;  %v118_v47 = vld [vmem:[#allocation7 + $0x1b8] sm:$0xff]  ;;  %v117_v48 = vld [vmem:[#allocation7 + $0x1b0] sm:$0xff] }
  0x3a   :  { %155 = vmatprep.subr.mxu0 %v78_v17  ;;  %298 = vmatprep.mubr.f32.mxu1 %v735_v0  ;;  %v116_v49 = vld [vmem:[#allocation7 + $0x1a8] sm:$0xff]  ;;  %v115_v50 = vld [vmem:[#allocation7 + $0x1a0] sm:$0xff]  ;;  %v114_v51 = vld [vmem:[#allocation7 + $0x198] sm:$0xff] }
  0x3b   :  { %156 = vmatpush1.msra.mxu0 %v77_v18  ;;  %v113_v52 = vld [vmem:[#allocation7 + $0x190] sm:$0xff]  ;;  %v112_v53 = vld [vmem:[#allocation7 + $0x188] sm:$0xff]  ;;  %v111_v54 = vld [vmem:[#allocation7 + $0x180] sm:$0xff] }
  0x3c   :  { %157 = vmatprep.subr.mxu0 %v76_v19  ;;  %v110_v55 = vld [vmem:[#allocation7 + $0x178] sm:$0xff]  ;;  %v109_v56 = vld [vmem:[#allocation7 + $0x170] sm:$0xff]  ;;  %v108_v57 = vld [vmem:[#allocation7 + $0x168] sm:$0xff] }
  0x3d   :  { %158 = vmatpush1.msra.mxu0 %v75_v20  ;;  %624 = vmatmul.mubr.msk.f32.gmra.mxu1 %vm129_vm7, %v62_v37  ;;  %v107_v58 = vld [vmem:[#allocation7 + $0x160] sm:$0xff]  ;;  %v106_v59 = vld [vmem:[#allocation7 + $0x158] sm:$0xff]  ;;  %v105_v60 = vld [vmem:[#allocation7 + $0x150] sm:$0xff]  ;;  %v736_v20 = vmov 1983009808  }
  0x3e   :  { %159 = vmatprep.subr.mxu0 %v74_v21  ;;  %v104_v61 = vld [vmem:[#allocation7 + $0x148] sm:$0xff]  ;;  %v103_v62 = vld [vmem:[#allocation7 + $0x140] sm:$0xff]  ;;  %v102_v63 = vld [vmem:[#allocation7 + $0x138] sm:$0xff]  ;;  %v327_v21 = vunpack.c.l.s4 %v736_v20 }
  0x3f   :  { %160 = vmatpush1.msra.mxu0 %v73_v22  ;;  %v101_v0 = vld [vmem:[#allocation7 + $0x130] sm:$0xff]  ;;  %v100_v1 = vld [vmem:[#allocation7 + $0x128] sm:$0xff]  ;;  %v99_v2 = vld [vmem:[#allocation7 + $0x120] sm:$0xff]  ;;  %v329_v22 = vlaneseq }
  0x40   :  { %161 = vmatprep.subr.mxu0 %v72_v23  ;;  %v98_v3 = vld [vmem:[#allocation7 + $0x118] sm:$0xff]  ;;  %v97_v4 = vld [vmem:[#allocation7 + $0x110] sm:$0xff]  ;;  %v96_v5 = vld [vmem:[#allocation7 + $0x108] sm:$0xff]  ;;  %v328_v27 = vunpack.c.0.s8 %v327_v21 }
  0x41   :  { %162 = vmatpush1.msra.mxu0 %v71_v25  ;;  %v95_v6 = vld [vmem:[#allocation7 + $0x100] sm:$0xff]  ;;  %v54_v7 = vld [vmem:[#allocation4] sm:$0xff]  ;;  %v57_v9 = vld [vmem:[#allocation4 + $0x18] sm:$0xff] }
  0x42   :  { %163 = vmatprep.subr.mxu0 %v70_v28  ;;  %v58_v8 = vld [vmem:[#allocation4 + $0x20] sm:$0xff]  ;;  %v61_v10 = vld [vmem:[#allocation4 + $0x38] sm:$0xff]  ;;  %v60_v11 = vld [vmem:[#allocation4 + $0x30] sm:$0xff]  ;;  %v777_v28 = vshrl.u32 %v329_v22, 7 }
  0x43   :  { %164 = vmatpush1.msra.mxu0 %v69_v30  ;;  %vm358_vm9 = vmor %vm313_vm1, %vm357_vm8 }
  0x44   :  { %165 = vmatprep.subr.mxu0 %v68_v31  ;;  %vm790_vm12 = vmor %vm359_vm10, %vm358_vm9 }
  0x45   :  { %166 = vmatpush1.msra.mxu0 %v67_v33 }
  0x46   :  { %167 = vmatprep.subr.mxu0 %v66_v34  ;;  %v780_v34 = vsub.s32 %v328_v27, %v777_v28 }
  0x47   :  { %168 = vmatpush1.msra.mxu0 %v65_v35 }
  0x48   :  { %169 = vmatprep.subr.mxu0 %v64_v36 }
  0x49   :  { %170 = vmatpush1.msra.mxu0 %v63_v38 }
  0x4a   :  { %171 = vmatprep.subr.mxu0 %v126_v39 }
  0x4b   :  { %172 = vmatpush2.msra.mxu0 %v125_v40  ;;  %v320_v40 = vld [vmem:[#allocation3] sm:$0xf] }
  0x4c   :  { %173 = vmatprep.subr.mxu0 %v124_v41 }
  0x4d   :  { %174 = vmatpush2.msra.mxu0 %v123_v42 }
  0x4e   :  { %175 = vmatprep.subr.mxu0 %v122_v43 }
  0x4f   :  { %176 = vmatpush2.msra.mxu0 %v121_v44 }
  0x50   :  { %177 = vmatprep.subr.mxu0 %v120_v45 }
  0x51   :  { %178 = vmatpush2.msra.mxu0 %v119_v46 }
  0x52   :  { %179 = vmatprep.subr.mxu0 %v118_v47 }
  0x53   :  { %180 = vmatpush2.msra.mxu0 %v117_v48 }
  0x54   :  { %181 = vmatprep.subr.mxu0 %v116_v49 }
  0x55   :  { %182 = vmatpush2.msra.mxu0 %v115_v50 }
  0x56   :  { %183 = vmatprep.subr.mxu0 %v114_v51 }
  0x57   :  { %184 = vmatpush2.msra.mxu0 %v113_v52 }
  0x58   :  { %185 = vmatprep.subr.mxu0 %v112_v53 }
  0x59   :  { %186 = vmatpush2.msra.mxu0 %v111_v54 }
  0x5a   :  { %187 = vmatprep.subr.mxu0 %v110_v55 }
  0x5b   :  { %188 = vmatpush2.msra.mxu0 %v109_v56 }
  0x5c   :  { %189 = vmatprep.subr.mxu0 %v108_v57 }
  0x5d   :  { %190 = vmatpush2.msra.mxu0 %v107_v58 }
  0x5e   :  { %191 = vmatprep.subr.mxu0 %v106_v59 }
  0x5f   :  { %192 = vmatpush2.msra.mxu0 %v105_v60 }
  0x60   :  { %193 = vmatprep.subr.mxu0 %v104_v61 }
  0x61   :  { %194 = vmatpush2.msra.mxu0 %v103_v62 }
  0x62   :  { %195 = vmatprep.subr.mxu0 %v102_v63 }
  0x63   :  { %196 = vmatpush2.msra.mxu0 %v101_v0 }
  0x64   :  { %197 = vmatprep.subr.mxu0 %v100_v1 }
  0x65   :  { %198 = vmatpush2.msra.mxu0 %v99_v2 }
  0x66   :  { %199 = vmatprep.subr.mxu0 %v98_v3 }
  0x67   :  { %200 = vmatpush2.msra.mxu0 %v97_v4 }
  0x68   :  { %201 = vmatprep.subr.mxu0 %v96_v5 }
  0x69   :  { %202 = vmatpush2.msra.mxu0 %v95_v6 }
  0x6a   :  { %204 = vmatmul.mubr.f32.vlgmr.msra.gmra.mxu0 %v54_v7 }
  0x6b   :  { %209 = vmatprep.mubr.f32.mxu0 %v58_v8 }
  0x6e   :  { %210 = vmatmul.mubr.f32.gmra.mxu0 %v57_v9 }
  0x6f   :  { %215 = vmatprep.mubr.f32.mxu0 %v61_v10 }
  0x72   :  { %216 = vmatmul.mubr.f32.gmra.mxu0 %v60_v11 }
  0xf5   :  { %v288_v12 = vpop.f32.mrf.mxu1 }
  0xf7   :  { %v290_v13 = vpop.f32.mrf.mxu1 }
  0xf9   :  { %v294_v14 = vpop.f32.mrf.mxu1 }
  0xfb   :  { %v296_v18 = vpop.f32.mrf.mxu1 }
  0xfd   :  { %v300_v24 = vpop.f32.mrf.mxu1 }
  0xff   :  { %v302_v31 = vpop.f32.mrf.mxu1 }
 0x12a   :  { %v205_v15 = vpop.f32.mrf.mxu0 }
 0x12b   :  { %v289_v16 = vadd.f32 %v288_v12, %v205_v15 }
 0x12c   :  { %v207_v17 = vpop.f32.mrf.mxu0 }
 0x12d   :  { %305 = vst [vmem:[#allocation2 + $0x28] sm:$0xff] %v289_v16  ;;  %v291_v19 = vadd.f32 %v290_v13, %v207_v17 }
 0x12e   :  { %v211_v23 = vpop.f32.mrf.mxu0 }
 0x12f   :  { %306 = vst [vmem:[#allocation2 + $0x10] sm:$0xff] %v291_v19  ;;  %v295_v25 = vadd.f32 %v294_v14, %v211_v23 }
 0x130   :  { %v213_v26 = vpop.f32.mrf.mxu0 }
 0x131   :  { %307 = vst [vmem:[#allocation2 + $0x8] sm:$0xff] %v295_v25  ;;  %v297_v29 = vadd.f32 %v296_v18, %v213_v26 }
 0x132   :  { %v217_v30 = vpop.f32.mrf.mxu0 }
 0x133   :  { %308 = vst [vmem:[#allocation2] sm:$0xff] %v297_v29  ;;  %v301_v32 = vadd.f32 %v300_v24, %v217_v30 }
 0x134   :  { %v219_v33 = vpop.f32.mrf.mxu0  ;;  %v321_v36 = vld [vmem:[#allocation2 + $0x28] sm:$0x3]  ;;  %v363_v3 = vld [vmem:[#allocation2 + $0x28] sm:$0x30] }
 0x135   :  { %309 = vst [vmem:[#allocation2 + $0x18] sm:$0xff] %v301_v32  ;;  %v303_v35 = vadd.f32 %v302_v31, %v219_v33 }
 0x136   :  { %v322_v37 = vld [vmem:[#allocation2 + $0x10] sm:$0x3]  ;;  %v636_v39 = vld [vmem:[#allocation2 + $0x28] ss:$-24 sps:$4 sm:$0xcc]  }
 0x137   :  { %v325_v38 = vcombine.low %v321_v36, %v322_v37  ;;  %310 = vst [vmem:[#allocation2 + $0x20] sm:$0xff] %v303_v35  ;;  %v637_v41 = vld [vmem:[#allocation2 + $0x2c] ss:$-24 sps:$4 sm:$0xcc]   ;;  %v348_v43 = vrot.slane %v636_v39, %v780_v34  ;;  %v364_v2 = vld [vmem:[#allocation2 + $0x10] sm:$0x30] }
 0x138   :  { %v390_v46 = vrot.slane %v637_v41, %v780_v34  ;;  %v367_v4 = vcombine.high %v363_v3, %v364_v2  ;;  %v400_v13 = vld [vmem:[#allocation2 + $0x8] sm:$0x3]  ;;  %v437_v24 = vld [vmem:[#allocation2 + $0x8] sm:$0x30] }
 0x139   :  { %v332_v42 = vrot.slane %v325_v38, %v780_v34  ;;  %v349_v45 = vcombine.high %v348_v43, %v348_v43 }
 0x13a   :  { %v638_v47 = vld [vmem:[#allocation2 + $0x8] ss:$-8 sps:$4 sm:$0xcc]   ;;  %v639_v48 = vld [vmem:[#allocation2 + $0xc] ss:$-8 sps:$4 sm:$0xcc]   ;;  %v391_v51 = vcombine.high %v390_v46, %v390_v46  ;;  %v374_v5 = vrot.slane %v367_v4, %v780_v34 }
 0x13b   :  { %v334_v44 = vadd.f32 %v332_v42, %v320_v40  ;;  %350 = vrot.lane.b32.xlu0 %v349_v45, %s737_s0  ;;  %v427_v49 = vrot.slane %v638_v47, %v780_v34  ;;  %v464_v50 = vrot.slane %v639_v48, %v780_v34  ;;  %v401_v14 = vld [vmem:[#allocation2] sm:$0x3]  ;;  %v438_v25 = vld [vmem:[#allocation2] sm:$0x30]  ;;  %v553_v42 = vsub.s32 0, %v777_v28 }
 0x13c   :  { %v404_v15 = vcombine.low %v400_v13, %v401_v14  ;;  %v441_v26 = vcombine.high %v437_v24, %v438_v25  ;;  %v474_v37 = vld [vmem:[#allocation2 + $0x18] sm:$0x3]  ;;  %v561_v45 = vsub.s32 2, %v777_v28  ;;  %v565_v46 = vsub.s32 3, %v777_v28 }
 0x13d   :  { %335 = vst [vmem:[#allocation3] sm:$0xf] %v334_v44  ;;  %v428_v52 = vcombine.high %v427_v49, %v427_v49  ;;  %v465_v55 = vcombine.high %v464_v50, %v464_v50  ;;  %v557_v44 = vsub.s32 1, %v777_v28  ;;  %v549_v47 = vld [vmem:[#allocation9] sm:$0x3f] }
 0x13e   :  { %v640_v53 = vld [vmem:[#allocation2 + $0x1c] ss:$8 sps:$4 sm:$0xcc]   ;;  %v641_v54 = vld [vmem:[#allocation2 + $0x18] ss:$8 sps:$4 sm:$0xcc]   ;;  %v411_v16 = vrot.slane %v404_v15, %v780_v34  ;;  %v448_v27 = vrot.slane %v441_v26, %v780_v34  ;;  %v554_v49 = vrot.slane %v549_v47, %v553_v42 }
 0x13f   :  { %392 = vrot.lane.b32.xlu0 %v391_v51, %s737_s0  ;;  %429 = vrot.lane.b32.xlu1 %v428_v52, %s737_s0  ;;  %v538_v56 = vrot.slane %v640_v53, %v780_v34  ;;  %v501_v57 = vrot.slane %v641_v54, %v780_v34  ;;  %v475_v38 = vld [vmem:[#allocation2 + $0x20] sm:$0x3]  ;;  %v558_v50 = vrot.slane %v549_v47, %v557_v44 }
 0x140   :  { %v478_v39 = vcombine.low %v474_v37, %v475_v38  ;;  %v562_v51 = vrot.slane %v549_v47, %v561_v45  ;;  %v566_v52 = vrot.slane %v549_v47, %v565_v46 }
 0x141   :  { %v502_v58 = vcombine.high %v501_v57, %v501_v57  ;;  %v539_v59 = vcombine.high %v538_v56, %v538_v56  ;;  %v575_v54 = vcombine.low %v554_v49, %v558_v50 }
 0x142   :  { %v485_v40 = vrot.slane %v478_v39, %v780_v34 }
 0x143   :  { %466 = vrot.lane.b32.xlu1 %v465_v55, %s737_s0  ;;  %503 = vrot.lane.b32.xlu0 %v502_v58, %s737_s0  ;;  %v576_v55 = vcombine.low %v562_v51, %v566_v52 }
 0x144   :  { %v336_v63 = vld [vmem:[#allocation3] sm:$0x3f] }
 0x147   :  { %540 = vrot.lane.b32.xlu1 %v539_v59, %s737_s0  ;;  %v511_v59 = vld [vmem:[#allocation2 + $0x18] sm:$0x30] }
 0x1ad   :  { %v351_v60 = vpop.permute.xlu0 %350 }
 0x1ae   :  { %v352_v61 = vrot.slane %v351_v60, 6 }
 0x1b0   :  { %v354_v0 = vsel %vm353_vm11, %v352_v61, %v351_v60  ;;  %v512_v60 = vld [vmem:[#allocation2 + $0x20] sm:$0x30]  ;;  %v583_v61 = vrot.slane %v575_v54, %v780_v34 }
 0x1b1   :  { %v356_v1 = vadd.f32 %v354_v0, %v336_v63  ;;  %v393_v8 = vpop.permute.xlu0 %392  ;;  %v430_v19 = vpop.permute.xlu1 %429  ;;  %v590_v63 = vrot.slane %v576_v55, %v780_v34  ;;  %v515_v0 = vcombine.high %v511_v59, %v512_v60 }
 0x1b2   :  { %v394_v9 = vrot.slane %v393_v8, 6  ;;  %v431_v20 = vrot.slane %v430_v19, 6 }
 0x1b3   :  { %361 = vst.msk [vmem:[#allocation3] sm:$0x3f] %vm790_vm12, %v356_v1  ;;  %v591_v1 = vcombine.low %v583_v61, %v590_v63  ;;  %v522_v2 = vrot.slane %v515_v0, %v780_v34 }
 0x1b4   :  { %v395_v11 = vsel %vm353_vm11, %v394_v9, %v393_v8  ;;  %v432_v22 = vsel %vm353_vm11, %v431_v20, %v430_v19  ;;  %v569_v8 = vsub.s32 4, %v777_v28  ;;  %v573_v9 = vsub.s32 5, %v777_v28 }
 0x1b5   :  { %v467_v31 = vpop.permute.xlu1 %466  ;;  %v504_v48 = vpop.permute.xlu0 %503 }
 0x1b6   :  { %v468_v32 = vrot.slane %v467_v31, 6  ;;  %v505_v53 = vrot.slane %v504_v48, 6 }
 0x1b8   :  { %v469_v35 = vsel %vm353_vm11, %v468_v32, %v467_v31  ;;  %v506_v57 = vsel %vm353_vm11, %v505_v53, %v504_v48 }
 0x1ba   :  { %v362_v6 = vld [vmem:[#allocation3 + $0x2] sm:$0xf] }
 0x1bb   :  { %v376_v7 = vadd.f32 %v374_v5, %v362_v6 }
 0x1bd   :  { %377 = vst [vmem:[#allocation3 + $0x2] sm:$0xf] %v376_v7  ;;  %v541_v7 = vpop.permute.xlu1 %540 }
 0x1c4   :  { %v378_v10 = vld [vmem:[#allocation3 + $0x2] sm:$0x3f] }
 0x1c5   :  { %v397_v12 = vadd.f32 %v395_v11, %v378_v10  ;;  %v542_v10 = vrot.slane %v541_v7, 6  ;;  %v570_v11 = vrot.slane %v549_v47, %v569_v8 }
 0x1c7   :  { %398 = vst.msk [vmem:[#allocation3 + $0x2] sm:$0x3f] %vm790_vm12, %v397_v12  ;;  %v574_v12 = vrot.slane %v549_v47, %v573_v9  ;;  %v543_v13 = vsel %vm353_vm11, %v542_v10, %v541_v7 }
 0x1ce   :  { %v399_v17 = vld [vmem:[#allocation3 + $0x4] sm:$0xf] }
 0x1cf   :  { %v413_v18 = vadd.f32 %v411_v16, %v399_v17  ;;  %v592_v16 = vcombine.low %v570_v11, %v574_v12 }
 0x1d1   :  { %414 = vst [vmem:[#allocation3 + $0x4] sm:$0xf] %v413_v18  ;;  %v599_v17 = vrot.slane %v592_v16, %v780_v34 }
 0x1d8   :  { %v415_v21 = vld [vmem:[#allocation3 + $0x4] sm:$0x3f] }
 0x1d9   :  { %v434_v23 = vadd.f32 %v432_v22, %v415_v21 }
 0x1db   :  { %435 = vst.msk [vmem:[#allocation3 + $0x4] sm:$0x3f] %vm790_vm12, %v434_v23 }
 0x1e2   :  { %v436_v29 = vld [vmem:[#allocation3 + $0x6] sm:$0xf] }
 0x1e3   :  { %v450_v30 = vadd.f32 %v448_v27, %v436_v29 }
 0x1e5   :  { %451 = vst [vmem:[#allocation3 + $0x6] sm:$0xf] %v450_v30 }
 0x1ec   :  { %v452_v33 = vld [vmem:[#allocation3 + $0x6] sm:$0x3f] }
 0x1ed   :  { %v471_v36 = vadd.f32 %v469_v35, %v452_v33 }
 0x1ef   :  { %472 = vst.msk [vmem:[#allocation3 + $0x6] sm:$0x3f] %vm790_vm12, %v471_v36 }
 0x1f6   :  { %v473_v41 = vld [vmem:[#allocation3 + $0x8] sm:$0xf] }
 0x1f7   :  { %v487_v43 = vadd.f32 %v485_v40, %v473_v41 }
 0x1f9   :  { %488 = vst [vmem:[#allocation3 + $0x8] sm:$0xf] %v487_v43 }
 0x200   :  { %v489_v56 = vld [vmem:[#allocation3 + $0x8] sm:$0x3f] }
 0x201   :  { %v508_v58 = vadd.f32 %v506_v57, %v489_v56 }
 0x203   :  { %509 = vst.msk [vmem:[#allocation3 + $0x8] sm:$0x3f] %vm790_vm12, %v508_v58 }
 0x20a   :  { %v510_v3 = vld [vmem:[#allocation3 + $0xa] sm:$0xf]  ;;  %v547_v4 = vld [vmem:[#allocation3 + $0x2] sm:$0xff] }
 0x20b   :  { %v524_v5 = vadd.f32 %v522_v2, %v510_v3  ;;  %v602_v6 = vmul.f32 %v591_v1, %v547_v4 }
 0x20d   :  { %525 = vst [vmem:[#allocation3 + $0xa] sm:$0xf] %v524_v5  ;;  %604 = vst [vmem:[#allocation10] sm:$0xff] %v602_v6 }
 0x214   :  { %v526_v14 = vld [vmem:[#allocation3 + $0xa] sm:$0x3f] }
 0x215   :  { %v545_v15 = vadd.f32 %v543_v13, %v526_v14 }
 0x217   :  { %546 = vst.msk [vmem:[#allocation3 + $0xa] sm:$0x3f] %vm790_vm12, %v545_v15 }
 0x21e   :  { %v548_v18 = vld [vmem:[#allocation3 + $0xa] sm:$0xf] }
 0x21f   :  { %v603_v19 = vmul.f32 %v599_v17, %v548_v18 }
 0x221   :  { %605 = vst [vmem:[#allocation10 + $0x8] sm:$0xf] %v603_v19 }
 0x222   :  { %713 = shalt.err (!%p710_p5)
}
 0x223   :  { %615 = dma.vmem_to_hbm [thread:$0]  %s613_s30, 192, %s832_s3, [#allocation6]  }
 0x224   :  { %726 = dma.done.wait [#allocation6], 192  }
 0x225   :  { %727 = vsyncadd [#allocation6], 4294967104 }
 0x226   :  { %619 = vsyncpa [#allocation5], 1 }
 0x227   :  { %620 = vsyncpa [#allocation8], 1 }
 0x228   :  { %621 = vsyncpa [#allocation6], 1 }

</bundles_post_ra>
